<compile_context>
chip_gen: v6e
topology: v6e:2x2x1
jax: 0.10.0
libtpu: 0.0.40
codegen_flags: <defaults>
</compile_context>

<pallas_src>
import jax
import jax.numpy as jnp
from jax import lax
from jax.experimental import pallas as pl
from jax.experimental.pallas import tpu as pltpu

IN_DIM = 8        # LunarLander-v2 state size
HID = 128         # layer1 width
N_ACT = 4         # number of discrete actions
HEAD_N = 128      # fused head lane width (4 logits + 1 value + zero pad)
MAX_ROW_TILE = 512  # rows per grid step (tiny working set, far under VMEM)


def policy_kernel(x_ref, w1_ref, b1_ref, wh_ref, bh_ref, out_ref):
    x = x_ref[...]            # (bm, 8)

    # ---- layer1 on the MXU: logical K=8 contraction (MXU is idle here) ----
    h = jnp.dot(x, w1_ref[...],
                preferred_element_type=jnp.float32) + b1_ref[...]   # (bm, 128)
    h = jnp.maximum(h, 0.0)

    # ---- fused action + value head: one MXU matmul, lane-dense result ----
    y = jnp.dot(h, wh_ref[...],
                preferred_element_type=jnp.float32) + bh_ref[...]   # (bm, 128)

    # (1, 128) lane mask; sublane-broadcast into the selects (no per-row iota).
    lane = lax.broadcasted_iota(jnp.int32, (1, HEAD_N), 1)
    act_mask = lane < N_ACT

    # log-softmax over the 4 action lanes (lanes >= 4 masked out of the reduce)
    masked = jnp.where(act_mask, y, jnp.float32(-1e30))
    m = jnp.max(masked, axis=-1, keepdims=True)
    shifted = masked - m
    s = jnp.sum(jnp.exp(shifted), axis=-1, keepdims=True)
    logp = shifted - jnp.log(s)

    # lanes 0..3 = log_probs, lane 4 = value, lanes 5..127 = y (== 0 padding)
    out_ref[...] = jnp.where(act_mask, logp, y)


def pack_head_params(wa, ba, wv, bv):
    """Build the fused (128, 128) head slab + (1, 128) bias ONCE (hoisted out
    of the per-call path). Padding columns are exact zeros — the kernel relies
    on that for output lanes 5..127."""
    wh = jnp.zeros((HID, HEAD_N), jnp.float32)
    wh = wh.at[:, :N_ACT].set(wa).at[:, N_ACT:N_ACT + 1].set(wv)
    bh = jnp.zeros((1, HEAD_N), jnp.float32)
    bh = bh.at[:, :N_ACT].set(ba).at[:, N_ACT:N_ACT + 1].set(bv)
    return wh, bh


@jax.jit
def policy_forward(x, w1, b1, wh, bh):
    """x: (B, 8) f32 batch of states (a single (8,) state also works).

    Returns (probs (B, 4), log_probs (B, 4), value (B, 1))."""
    x = jnp.asarray(x, jnp.float32)
    if x.ndim == 1:
        x = x[None, :]
    B = x.shape[0]

    # Pad batch to a sublane multiple of 8; pick the row tile so that
    #  * large batches use big tiles (amortize ~0.35 us/step overhead), and
    #  * B >= 16 yields at least 2 grid steps (v7x has 2 TensorCores).
    b_pad = max(8, ((B + 7) // 8) * 8)
    if b_pad >= 16:
        bm = min(MAX_ROW_TILE, ((b_pad // 2 + 7) // 8) * 8)
    else:
        bm = b_pad
    b_pad = ((b_pad + bm - 1) // bm) * bm
    if b_pad != B:
        x = jnp.pad(x, ((0, b_pad - B), (0, 0)))

    cost = pl.CostEstimate(
        flops=2 * b_pad * (IN_DIM * HID + HID * HEAD_N),
        transcendentals=b_pad * (HEAD_N + 1),
        bytes_accessed=4 * (b_pad * IN_DIM + IN_DIM * HID + HID
                            + HID * HEAD_N + HEAD_N + b_pad * HEAD_N),
    )

    out = pl.pallas_call(
        policy_kernel,
        out_shape=jax.ShapeDtypeStruct((b_pad, HEAD_N), jnp.float32),
        grid=(b_pad // bm,),
        in_specs=[
            pl.BlockSpec((bm, IN_DIM), lambda i: (i, 0)),   # states: tiled rows
            pl.BlockSpec((IN_DIM, HID), lambda i: (0, 0)),  # w1: VMEM-resident
            pl.BlockSpec((1, HID), lambda i: (0, 0)),       # b1
            pl.BlockSpec((HID, HEAD_N), lambda i: (0, 0)),  # fused head weight
            pl.BlockSpec((1, HEAD_N), lambda i: (0, 0)),    # fused head bias
        ],
        out_specs=pl.BlockSpec((bm, HEAD_N), lambda i: (i, 0)),
        compiler_params=pltpu.CompilerParams(
            dimension_semantics=("parallel",)),
        cost_estimate=cost,
    )(x, w1, b1, wh, bh)

    log_probs = out[:B, :N_ACT]
    value = out[:B, N_ACT:N_ACT + 1]
    probs = jnp.exp(log_probs)
    return probs, log_probs, value


def init_params(key):
    """torch.nn.Linear-style uniform(-1/sqrt(fan_in), 1/sqrt(fan_in)) init.
    Weights are stored transposed vs. torch, i.e. (in_features, out_features)."""
    def linear(key, fan_in, fan_out):
        k_w, k_b = jax.random.split(key)
        bound = 1.0 / jnp.sqrt(jnp.float32(fan_in))
        w = jax.random.uniform(k_w, (fan_in, fan_out), jnp.float32, -bound, bound)
        b = jax.random.uniform(k_b, (1, fan_out), jnp.float32, -bound, bound)
        return w, b

    k1, k2, k3 = jax.random.split(key, 3)
    w1, b1 = linear(k1, IN_DIM, HID)   # layer1:  Linear(8, 128)
    wa, ba = linear(k2, HID, N_ACT)    # layer_a: Linear(128, 4)
    wv, bv = linear(k3, HID, 1)        # layer_v: Linear(128, 1)
    return w1, b1, wa, ba, wv, bv


if __name__ == "__main__":
    key = jax.random.PRNGKey(0)
    k_params, k_state, k_sample = jax.random.split(key, 3)

    w1, b1, wa, ba, wv, bv = init_params(k_params)
    wh, bh = pack_head_params(wa, ba, wv, bv)   # built once, reused every call

    # Batch of 8 LunarLander states (sublane-aligned; amortizes launch/DMA).
    B = 8
    x = jax.random.normal(k_state, (B, IN_DIM), jnp.float32)

    probs, log_probs, value = policy_forward(x, w1, b1, wh, bh)
    jax.block_until_ready((probs, log_probs, value))

    # Categorical(probs).sample() / dist.log_prob(action) — stochastic glue
    # outside the kernel, driven by the kernel's log-probabilities.
    # TODO(synk): reward buffers / compute_loss are host-side training code.
    action = jax.random.categorical(k_sample, log_probs, axis=-1)          # (B,)
    log_prob_of_action = jnp.take_along_axis(
        log_probs, action[:, None], axis=-1)[:, 0]
    jax.block_until_ready((action, log_prob_of_action))

    # Reference check in plain JAX (matches the PyTorch module's forward).
    h_ref = jnp.maximum(x @ w1 + b1, 0.0)
    logits_ref = h_ref @ wa + ba
    probs_ref = jax.nn.softmax(logits_ref, axis=-1)
    logp_ref = jax.nn.log_softmax(logits_ref, axis=-1)
    value_ref = h_ref @ wv + bv
    assert jnp.allclose(probs, probs_ref, atol=1e-5)
    assert jnp.allclose(log_probs, logp_ref, atol=1e-5)
    assert jnp.allclose(value, value_ref, atol=1e-5)

    print("KERNEL_OK")
</pallas_src>

<mosaic_0001>
module attributes {stable_mosaic.version = 11 : i64} {
  func.func @policy_kernel(%arg0: i32, %arg1: memref<8x8xf32, #tpu.memory_space<vmem>>, %arg2: memref<8x128xf32, #tpu.memory_space<vmem>>, %arg3: memref<1x128xf32, #tpu.memory_space<vmem>>, %arg4: memref<128x128xf32, #tpu.memory_space<vmem>>, %arg5: memref<1x128xf32, #tpu.memory_space<vmem>>, %arg6: memref<8x128xf32, #tpu.memory_space<vmem>>) attributes {dimension_semantics = [#tpu.dimension_semantics<parallel>], iteration_bounds = array<i64: 1>, scalar_prefetch = 0 : i64, scratch_operands = 0 : i64, tpu.core_type = #tpu.core_type<tc>, window_params = [{transform_indices = @transform_0, window_bounds = array<i64: 8, 8>}, {pipeline_mode = #tpu.pipeline_mode<synchronous>, transform_indices = @transform_1, window_bounds = array<i64: 8, 128>}, {pipeline_mode = #tpu.pipeline_mode<synchronous>, transform_indices = @transform_2, window_bounds = array<i64: 1, 128>}, {pipeline_mode = #tpu.pipeline_mode<synchronous>, transform_indices = @transform_3, window_bounds = array<i64: 128, 128>}, {pipeline_mode = #tpu.pipeline_mode<synchronous>, transform_indices = @transform_4, window_bounds = array<i64: 1, 128>}, {transform_indices = @transform_5, window_bounds = array<i64: 8, 128>}]} {
    %c0 = arith.constant 0 : index
    %c0_0 = arith.constant 0 : index
    %0 = vector.load %arg1[%c0, %c0_0] : memref<8x8xf32, #tpu.memory_space<vmem>>, vector<8x8xf32>
    %c0_1 = arith.constant 0 : index
    %c0_2 = arith.constant 0 : index
    %1 = vector.load %arg2[%c0_1, %c0_2] : memref<8x128xf32, #tpu.memory_space<vmem>>, vector<8x128xf32>
    %cst = arith.constant dense<0.000000e+00> : vector<8x128xf32>
    %2 = tpu.matmul %0, %1, %cst {dimension_numbers = #tpu.dot_dimension_numbers<[1], [0], [0], [1], [0, 0, 1, 1], [], []>} : vector<8x8xf32>, vector<8x128xf32>, vector<8x128xf32> -> vector<8x128xf32>
    %c0_3 = arith.constant 0 : index
    %c0_4 = arith.constant 0 : index
    %3 = vector.load %arg3[%c0_3, %c0_4] : memref<1x128xf32, #tpu.memory_space<vmem>>, vector<1x128xf32>
    %4 = vector.broadcast %3 : vector<1x128xf32> to vector<8x128xf32>
    %5 = arith.addf %2, %4 : vector<8x128xf32>
    %cst_5 = arith.constant 0.000000e+00 : f32
    %6 = vector.broadcast %cst_5 : f32 to vector<8x128xf32>
    %7 = arith.maximumf %5, %6 : vector<8x128xf32>
    %c0_6 = arith.constant 0 : index
    %c0_7 = arith.constant 0 : index
    %8 = vector.load %arg4[%c0_6, %c0_7] : memref<128x128xf32, #tpu.memory_space<vmem>>, vector<128x128xf32>
    %cst_8 = arith.constant dense<0.000000e+00> : vector<8x128xf32>
    %9 = tpu.matmul %7, %8, %cst_8 {dimension_numbers = #tpu.dot_dimension_numbers<[1], [0], [0], [1], [0, 0, 1, 1], [], []>} : vector<8x128xf32>, vector<128x128xf32>, vector<8x128xf32> -> vector<8x128xf32>
    %c0_9 = arith.constant 0 : index
    %c0_10 = arith.constant 0 : index
    %10 = vector.load %arg5[%c0_9, %c0_10] : memref<1x128xf32, #tpu.memory_space<vmem>>, vector<1x128xf32>
    %11 = vector.broadcast %10 : vector<1x128xf32> to vector<8x128xf32>
    %12 = arith.addf %9, %11 : vector<8x128xf32>
    %13 = tpu.iota {dimensions = array<i32: 1>} : vector<1x128xi32>
    %c4_i32 = arith.constant 4 : i32
    %14 = vector.broadcast %c4_i32 : i32 to vector<1x128xi32>
    %15 = arith.cmpi slt, %13, %14 : vector<1x128xi32>
    %cst_11 = arith.constant -1.000000e+30 : f32
    %16 = vector.shape_cast %15 : vector<1x128xi1> to vector<1x128xi1>
    %17 = vector.broadcast %16 : vector<1x128xi1> to vector<8x128xi1>
    %18 = vector.broadcast %cst_11 : f32 to vector<8x128xf32>
    %19 = arith.select %17, %12, %18 : vector<8x128xi1>, vector<8x128xf32>
    %cst_12 = arith.constant dense<0xFF800000> : vector<8xf32>
    %20 = vector.multi_reduction <maximumf>, %19, %cst_12 [1] : vector<8x128xf32> to vector<8xf32>
    %21 = vector.shape_cast %20 : vector<8xf32> to vector<8x1xf32>
    %22 = vector.broadcast %21 : vector<8x1xf32> to vector<8x128xf32>
    %23 = arith.subf %19, %22 : vector<8x128xf32>
    %24 = math.exp %23 : vector<8x128xf32>
    %cst_13 = arith.constant dense<0.000000e+00> : vector<8xf32>
    %25 = vector.multi_reduction <add>, %24, %cst_13 [1] : vector<8x128xf32> to vector<8xf32>
    %26 = vector.shape_cast %25 : vector<8xf32> to vector<8x1xf32>
    %27 = math.log %26 : vector<8x1xf32>
    %28 = vector.broadcast %27 : vector<8x1xf32> to vector<8x128xf32>
    %29 = arith.subf %23, %28 : vector<8x128xf32>
    %30 = vector.shape_cast %15 : vector<1x128xi1> to vector<1x128xi1>
    %31 = vector.broadcast %30 : vector<1x128xi1> to vector<8x128xi1>
    %32 = arith.select %31, %29, %12 : vector<8x128xi1>, vector<8x128xf32>
    %c0_14 = arith.constant 0 : index
    %c0_15 = arith.constant 0 : index
    %33 = vector.load %arg6[%c0_14, %c0_15] : memref<8x128xf32, #tpu.memory_space<vmem>>, vector<8x128xf32>
    tpu.vector_store %arg6[%c0_14, %c0_15], %32 {strides = array<i32>} : memref<8x128xf32, #tpu.memory_space<vmem>>, vector<8x128xf32>,
    return
  }
  func.func @transform_0(%arg0: i32) -> (i32, i32) {
    %c0_i32 = arith.constant 0 : i32
    %c0_i32_0 = arith.constant 0 : i32
    return %arg0, %c0_i32 : i32, i32
  }
  func.func @transform_1(%arg0: i32) -> (i32, i32) {
    %c0_i32 = arith.constant 0 : i32
    %c0_i32_0 = arith.constant 0 : i32
    %c0_i32_1 = arith.constant 0 : i32
    return %c0_i32, %c0_i32_0 : i32, i32
  }
  func.func @transform_2(%arg0: i32) -> (i32, i32) {
    %c0_i32 = arith.constant 0 : i32
    %c0_i32_0 = arith.constant 0 : i32
    %c0_i32_1 = arith.constant 0 : i32
    return %c0_i32, %c0_i32_0 : i32, i32
  }
  func.func @transform_3(%arg0: i32) -> (i32, i32) {
    %c0_i32 = arith.constant 0 : i32
    %c0_i32_0 = arith.constant 0 : i32
    %c0_i32_1 = arith.constant 0 : i32
    return %c0_i32, %c0_i32_0 : i32, i32
  }
  func.func @transform_4(%arg0: i32) -> (i32, i32) {
    %c0_i32 = arith.constant 0 : i32
    %c0_i32_0 = arith.constant 0 : i32
    %c0_i32_1 = arith.constant 0 : i32
    return %c0_i32, %c0_i32_0 : i32, i32
  }
  func.func @transform_5(%arg0: i32) -> (i32, i32) {
    %c0_i32 = arith.constant 0 : i32
    %c0_i32_0 = arith.constant 0 : i32
    return %arg0, %c0_i32 : i32, i32
  }
}

</mosaic_0001>

<bundles_post_ra>
// kernel: policy_forward.1
= control target key start
LH: loop header
LB: loop body
LE: loop exit
PB: predicated region body
PF: predicated region fallthrough
CT: control target
= control target key end

     0   :  { %10 = vsyncpa [#allocation3], 0  ;;  %s452_s0 = inlined_call_operand.hbm [shape: f32[8,8], index: 0, kind: input, shape index: {}]   ;;  %s453_s1 = inlined_call_operand.hbm [shape: f32[8,128], index: 1, kind: input, shape index: {}]   ;;  %s454_s2 = inlined_call_operand.vmem [shape: f32[1,128], index: 2, kind: input, shape index: {}]   ;;  %s455_s3 = inlined_call_operand.hbm [shape: f32[128,128], index: 3, kind: input, shape index: {}]   ;;  %s456_s4 = inlined_call_operand.vmem [shape: f32[1,128], index: 4, kind: input, shape index: {}]   ;;  %s457_s5 = inlined_call_operand.vmem [shape: f32[8,128], index: 5, kind: output, shape index: {}]  }
   0x1   :  { %11 = vsyncpa [#allocation5], 0  ;;  %s395_s18 = smov [#allocation4]   ;;  %s396_s20 = smov [#allocation2]  }
   0x2   :  { %s28_s19 = sshll.u32 %s395_s18, 4  ;;  %s18_s21 = sshll.u32 %s396_s20, 4  ;;  %s29_s19 = int_to_ptr.vmem [resolvable:$true] %s28_s19  ;;  %s19_s21 = int_to_ptr.vmem [resolvable:$true] %s18_s21 }
   0x3   :  { %s339_s22 = scalar_lea.vmem %s29_s19, 128  ;;  %p344_p1 = scmp.lt.s32.totalorder %s29_s19, %s29_s19 }
   0x4   :  { %p340_p0 = scmp.ne.s32.totalorder %s29_s19, %s339_s22  ;;  %p345_p2 = scmp.lt.s32.totalorder %s339_s22, %s339_s22 }
   0x6   :  { %p346_p3 = por %p345_p2, %p344_p1 }
   0x8   :  { %p347_p4 = pnand %p346_p3, %p340_p0 }
   0xa   :  { %350 = shalt.err (!%p347_p4)
}
   0xb   :  { %31 = dma.hbm_to_vmem [thread:$0]  %s453_s1, 128, %s29_s19, [#allocation5]  }
   0xc   :  { %s359_s25 = scalar_lea.vmem %s19_s21, 128  ;;  %p364_p6 = scmp.lt.s32.totalorder %s19_s21, %s19_s21 }
   0xd   :  { %p360_p5 = scmp.ne.s32.totalorder %s19_s21, %s359_s25  ;;  %p365_p7 = scmp.lt.s32.totalorder %s359_s25, %s359_s25 }
   0xf   :  { %p366_p8 = por %p365_p7, %p364_p6 }
  0x11   :  { %p367_p9 = pnand %p366_p8, %p360_p5 }
  0x13   :  { %370 = shalt.err (!%p367_p9)
}
  0x14   :  { %21 = dma.hbm_to_vmem [thread:$0]  %s452_s0, 128, %s19_s21, [#allocation3]  }
  0x15   :  { %s397_s28 = smov [#allocation6]  }
  0x16   :  { %s39_s29 = sshll.u32 %s397_s28, 4  ;;  %s40_s29 = int_to_ptr.vmem [resolvable:$true] %s39_s29 }
  0x17   :  { %s379_s30 = scalar_lea.vmem %s40_s29, 2048  ;;  %p384_p11 = scmp.lt.s32.totalorder %s40_s29, %s40_s29 }
  0x18   :  { %p380_p10 = scmp.ne.s32.totalorder %s40_s29, %s379_s30  ;;  %p385_p12 = scmp.lt.s32.totalorder %s379_s30, %s379_s30 }
  0x1a   :  { %p386_p13 = por %p385_p12, %p384_p11 }
  0x1c   :  { %p387_p0 = pnand %p386_p13, %p380_p10 }
  0x1e   :  { %390 = shalt.err (!%p387_p0)
}
  0x1f   :  { %s398_s1 = smov 128   ;;  %s399_s6 = smov 8  }
  0x20   :  { %45 = dma.hbm_to_vmem [thread:$0]  %s455_s3, 2048, %s40_s29, [#allocation5], %s398_s1, %s398_s1, %s399_s6  }
  0x21   :  { %391 = dma.done.wait [#allocation3], 128  }
  0x22   :  { %392 = vsyncadd [#allocation3], 4294967168 }
  0x23   :  { %393 = dma.done.wait [#allocation5], 2176  }
  0x24   :  { %394 = vsyncadd [#allocation5], 4294965120  ;;  %v400_v0 = vmov 0.0   ;;  %vm401_vm0 = vmmov 0   ;;  %vm66_vm1 = vcmask 64512   ;;  %v58_v1 = vld [vmem:[#allocation4] sm:$0xff]  ;;  %v234_v24 = vlaneseq }
  0x25   :  { %280 = vmatprep.subr.mxu0 %v400_v0  ;;  %282 = vmatprep.mubr.msk.f32.mxu0 %vm401_vm0, %v400_v0  ;;  %v57_v2 = vld [vmem:[#allocation2] sm:$0xff]  ;;  %v156_v3 = vld [vmem:[#allocation6 + $0x78] sm:$0xff]  ;;  %v154_v5 = vld [vmem:[#allocation6 + $0x68] sm:$0xff] }
  0x26   :  { %285 = vmatprep.subr.mxu1 %v400_v0  ;;  %317 = vmatprep.mubr.msk.f32.mxu1 %vm401_vm0, %v400_v0  ;;  %v155_v4 = vld [vmem:[#allocation6 + $0x70] sm:$0xff]  ;;  %v153_v6 = vld [vmem:[#allocation6 + $0x60] sm:$0xff]  ;;  %v152_v7 = vld [vmem:[#allocation6 + $0x58] sm:$0xff]  ;;  %v235_v25 = vand.u32 127, %v234_v24 }
  0x27   :  { %281 = vmatpush3.msra.mxu0 %v58_v1  ;;  %286 = vmatpush3.msra.mxu1 %v156_v3  ;;  %v151_v8 = vld [vmem:[#allocation6 + $0x50] sm:$0xff]  ;;  %v150_v9 = vld [vmem:[#allocation6 + $0x48] sm:$0xff]  ;;  %v149_v10 = vld [vmem:[#allocation6 + $0x40] sm:$0xff] }
  0x28   :  { %283 = vmatmul.mubr.msk.f32.vlgmr.msra.gmra.mxu0 %vm66_vm1, %v57_v2  ;;  %287 = vmatprep.subr.mxu1 %v400_v0  ;;  %v148_v11 = vld [vmem:[#allocation6 + $0x38] sm:$0xff]  ;;  %v147_v12 = vld [vmem:[#allocation6 + $0x30] sm:$0xff]  ;;  %v146_v13 = vld [vmem:[#allocation6 + $0x28] sm:$0xff]  ;;  %vm236_vm2 = vcmp.lt.s32.totalorder %v235_v25, 4 }
  0x29   :  { %288 = vmatpush3.msra.mxu1 %v155_v4  ;;  %v145_v14 = vld [vmem:[#allocation6 + $0x20] sm:$0xff]  ;;  %v144_v15 = vld [vmem:[#allocation6 + $0x18] sm:$0xff]  ;;  %v143_v16 = vld [vmem:[#allocation6 + $0x10] sm:$0xff] }
  0x2a   :  { %289 = vmatprep.subr.mxu1 %v400_v0  ;;  %v142_v17 = vld [vmem:[#allocation6 + $0x8] sm:$0xff]  ;;  %v141_v18 = vld [vmem:[#allocation6] sm:$0xff]  ;;  %v258_v19 = vld [vmem:[%s454_s2] ss:$0 sm:$0xff] }
  0x2b   :  { %290 = vmatpush3.msra.mxu1 %v154_v5  ;;  %v260_v26 = vld [vmem:[%s456_s4] ss:$0 sm:$0xff] }
  0x2c   :  { %291 = vmatprep.subr.mxu1 %v400_v0 }
  0x2d   :  { %292 = vmatpush3.msra.mxu1 %v153_v6 }
  0x2e   :  { %293 = vmatprep.subr.mxu1 %v400_v0 }
  0x2f   :  { %294 = vmatpush3.msra.mxu1 %v152_v7 }
  0x30   :  { %295 = vmatprep.subr.mxu1 %v400_v0 }
  0x31   :  { %296 = vmatpush3.msra.mxu1 %v151_v8 }
  0x32   :  { %297 = vmatprep.subr.mxu1 %v400_v0 }
  0x33   :  { %298 = vmatpush3.msra.mxu1 %v150_v9 }
  0x34   :  { %299 = vmatprep.subr.mxu1 %v400_v0 }
  0x35   :  { %300 = vmatpush3.msra.mxu1 %v149_v10 }
  0x36   :  { %301 = vmatprep.subr.mxu1 %v400_v0 }
  0x37   :  { %302 = vmatpush3.msra.mxu1 %v148_v11 }
  0x38   :  { %303 = vmatprep.subr.mxu1 %v400_v0 }
  0x39   :  { %304 = vmatpush3.msra.mxu1 %v147_v12 }
  0x3a   :  { %305 = vmatprep.subr.mxu1 %v400_v0 }
  0x3b   :  { %306 = vmatpush3.msra.mxu1 %v146_v13 }
  0x3c   :  { %307 = vmatprep.subr.mxu1 %v400_v0 }
  0x3d   :  { %308 = vmatpush3.msra.mxu1 %v145_v14 }
  0x3e   :  { %309 = vmatprep.subr.mxu1 %v400_v0 }
  0x3f   :  { %310 = vmatpush3.msra.mxu1 %v144_v15 }
  0x40   :  { %311 = vmatprep.subr.mxu1 %v400_v0 }
  0x41   :  { %312 = vmatpush3.msra.mxu1 %v143_v16 }
  0x42   :  { %313 = vmatprep.subr.mxu1 %v400_v0 }
  0x43   :  { %314 = vmatpush3.msra.mxu1 %v142_v17 }
  0x44   :  { %315 = vmatprep.subr.mxu1 %v400_v0 }
  0x45   :  { %316 = vmatpush3.msra.mxu1 %v141_v18 }
  0xe8   :  { %v136_v20 = vpop.f32.mrf.mxu0 }
  0xe9   :  { %v137_v21 = vadd.f32 %v258_v19, %v136_v20 }
  0xea   :  { %v284_v22 = vpop.f32.mrf.mxu0 }
  0xeb   :  { %v140_v23 = vmax.f32 %v137_v21, 0.0 }
  0xed   :  { %318 = vmatmul.mubr.f32.vlgmr.msra.gmra.mxu1 %v140_v23 }
 0x1ad   :  { %v230_v27 = vpop.f32.mrf.mxu1 }
 0x1ae   :  { %v231_v28 = vadd.f32 %v260_v26, %v230_v27 }
 0x1af   :  { %v319_v29 = vpop.f32.mrf.mxu1 }
 0x1b0   :  { %v239_v30 = vsel %vm236_vm2, %v231_v28, -1e+30 }
 0x1b1   :  { %240 = vmax.xlane.f32.xlu0 %v239_v30 }
 0x23a   :  { %v241_v31 = vpop.xlane.xlu0 %240 }
 0x23b   :  { %v242_v32 = vsub.f32 %v239_v30, %v241_v31 }
 0x23d   :  { %v243_v33 = vmul.f32 1.442695, %v242_v32 }
 0x23f   :  { %327 = vpow2.f32 %v243_v33 }
 0x24c   :  { %v328_v34 = vpop.eup %327 }
 0x24d   :  { %245 = vadd.xlane.f32.xlu0 %v328_v34 }
 0x2d6   :  { %v246_v35 = vpop.xlane.xlu0 %245 }
 0x2d7   :  { %329 = vlog2.f32 %v246_v35 }
 0x2e4   :  { %v330_v36 = vpop.eup %329 }
 0x2e5   :  { %v248_v37 = vmul.f32 0.6931472, %v330_v36 }
 0x2e7   :  { %v249_v38 = vsub.f32 %v242_v32, %v248_v37 }
 0x2e9   :  { %v250_v39 = vsel %vm236_vm2, %v249_v38, %v231_v28 }
 0x2ea   :  { %251 = vst [vmem:[%s457_s5] sm:$0xff] %v250_v39 }
 0x2eb   :  { %256 = vsyncpa [#allocation3], 1 }
 0x2ec   :  { %257 = vsyncpa [#allocation5], 1 }

</bundles_post_ra>
